<compile_context>
chip_gen: v7x
topology: tpu7x:2x2x1
jax: 0.10.0
libtpu: 0.0.40
codegen_flags: <defaults>
</compile_context>

<pallas_src>
import jax
import jax.numpy as jnp
from jax import lax
from jax.experimental import pallas as pl
from jax.experimental.pallas import tpu as pltpu


MAX_TILE_HW = 8192            # lane-axis tile for the HW-reduction path
MAX_TILE_ROWS = 4096          # caps lane-padded out/acc VMEM + helps megacore


def _round_up(a: int, b: int) -> int:
    return ((a + b - 1) // b) * b


def _vmem_capacity_bytes() -> int:
    """Per-core VMEM capacity; conservative (v7x-sized) fallback."""
    try:
        info = pltpu.get_tpu_info()
        cap = getattr(info, "vmem_capacity_bytes", None)
        if cap:
            return int(cap)
    except Exception:
        pass
    return 64 * 1024 * 1024


def _choose_pack(nc: int, hw: int) -> int:
    """Pack g spatial windows per lane row when HW < 128 (lane-density win)."""
    if hw >= 128 or nc <= 1:
        return 1
    best_g = 1
    best_density = hw / _round_up(hw, 128)
    for g in (2, 4, 8):                       # prefer the smallest winning g
        if nc % g != 0:
            continue
        density = (g * hw) / _round_up(g * hw, 128)
        if density > best_density + 1e-9:
            best_g, best_density = g, density
    return best_g


def _choose_rows(nrows: int, lane_width: int, itemsize: int,
                 target_tile_bytes: int) -> int:
    """Row-tile size: ~target bytes per input buffer, but always split the
    parallel axis into >= 2 blocks (v7x megacore) and cap the lane-padded
    (tile, 1) out/acc footprint."""
    lanes = _round_up(lane_width, 128)        # VMEM footprint is lane-padded
    rows = max(8, target_tile_bytes // (lanes * itemsize))
    rows = (rows // 8) * 8                    # sublane multiple of 8
    rows = min(rows, MAX_TILE_ROWS, max(8, _round_up(pl.cdiv(nrows, 2), 8)))
    return nrows if rows >= nrows else rows   # full dim is always legal


def _gem_single_tile_kernel_factory(eps: float, hw: int, g: int):
    """Path A: the whole (packed) spatial extent fits in one lane tile.

    Grid = (row_blocks,).  Refs:
      p_ref: SMEM (1,)            learnable GeM exponent
      x_ref: VMEM (tile_r, g*hw)  g spatial windows packed side by side
      o_ref: VMEM (tile_r, g)     per-window GeM result
    """

    def kernel(p_ref, x_ref, o_ref):
        p = p_ref[0]
        # f32 compute path (required on v5e; safe for the 1e-5 tolerance).
        x = x_ref[...].astype(jnp.float32)
        xc = jnp.maximum(x, jnp.float32(eps))        # clamp(min=eps) -> xc > 0
        xp = jnp.exp(p * jnp.log(xc))                # xc ** p (EUP; xc > 0)

        if g == 1:
            sums = jnp.sum(xp, axis=-1, keepdims=True)
        else:
            # Segmented reduce over the g packed windows.  The g per-window
            # sums are scattered into the (rows, g) result with masked adds
            # (a lane-axis "concatenate" written with ops that always lower).
            col = lax.broadcasted_iota(jnp.int32, xp.shape, 1)
            out_lane = lax.broadcasted_iota(jnp.int32, o_ref.shape, 1)
            sums = jnp.zeros(o_ref.shape, jnp.float32)
            for s in range(g):
                in_seg = (col >= s * hw) & (col < (s + 1) * hw)
                seg = jnp.sum(jnp.where(in_seg, xp, jnp.float32(0.0)),
                              axis=-1, keepdims=True)
                sums = sums + jnp.where(out_lane == s, seg, jnp.float32(0.0))

        m = sums * jnp.float32(1.0 / hw)             # avg_pool2d over (H, W)
        inv_p = 1.0 / p                              # scalar recip, hoisted
        o_ref[...] = jnp.exp(jnp.log(m) * inv_p).astype(o_ref.dtype)

    return kernel


def _gem_reduce_kernel_factory(eps: float, hw_true: int, tile_hw: int,
                               needs_mask: bool):
    """Path B (HW > MAX_TILE_HW): grid = (row_blocks, hw_blocks), HW last.

    Refs:
      p_ref:   SMEM (1,)
      x_ref:   VMEM (tile_r, tile_hw)  one HW chunk of the flattened input
      o_ref:   VMEM (tile_r, 1)        written on the last HW step
      acc_ref: VMEM (tile_r, 1) f32    running sum of x**p over HW
    """

    def kernel(p_ref, x_ref, o_ref, acc_ref):
        k = pl.program_id(1)
        nk = pl.num_programs(1)
        p = p_ref[0]

        @pl.when(k == 0)
        def _init():
            acc_ref[...] = jnp.zeros_like(acc_ref)

        x = x_ref[...].astype(jnp.float32)
        xc = jnp.maximum(x, jnp.float32(eps))
        xp = jnp.exp(p * jnp.log(xc))                # xc ** p, xc > 0

        if needs_mask:
            # Only the final (partial) HW tile pays the iota/compare/select.
            @pl.when(k < nk - 1)
            def _acc_full():
                acc_ref[...] += jnp.sum(xp, axis=-1, keepdims=True)

            @pl.when(k == nk - 1)
            def _acc_masked():
                col = k * tile_hw + lax.broadcasted_iota(jnp.int32, xp.shape, 1)
                xpm = jnp.where(col < hw_true, xp, jnp.float32(0.0))
                acc_ref[...] += jnp.sum(xpm, axis=-1, keepdims=True)
        else:
            acc_ref[...] += jnp.sum(xp, axis=-1, keepdims=True)

        @pl.when(k == nk - 1)
        def _finalize():
            m = acc_ref[...] * jnp.float32(1.0 / hw_true)
            o_ref[...] = jnp.exp(jnp.log(m) * (1.0 / p)).astype(o_ref.dtype)

    return kernel


def gem_pallas(x: jax.Array, p: jax.Array, eps: float = 1e-6) -> jax.Array:
    """GeM pooling. x: (N, C, H, W), p: (1,) float32. Returns (N, C, 1, 1)."""
    N, C, H, W = x.shape
    NC, HW = N * C, H * W
    itemsize = jnp.dtype(x.dtype).itemsize

    # Generation-aware budgets (v5e/v6e: 128 MiB VMEM; v7x: 64 MiB per TC).
    vmem_cap = _vmem_capacity_bytes()
    if vmem_cap >= 100 * 1024 * 1024:
        target_tile_bytes = 16 * 1024 * 1024
        vmem_limit = 80 * 1024 * 1024
    else:
        target_tile_bytes = 12 * 1024 * 1024
        vmem_limit = 48 * 1024 * 1024

    g = _choose_pack(NC, HW)          # pack g windows per lane row if HW < 128
    R, L = NC // g, g * HW
    x2d = x.reshape(R, L)             # free reshape of contiguous NCHW

    if L <= MAX_TILE_HW:
        # Path A: whole spatial extent per row fits in one lane tile.
        tile_r = _choose_rows(R, L, itemsize, target_tile_bytes)
        kernel = _gem_single_tile_kernel_factory(eps, HW, g)
        out2d = pl.pallas_call(
            kernel,
            out_shape=jax.ShapeDtypeStruct((R, g), x.dtype),
            grid_spec=pltpu.PrefetchScalarGridSpec(
                num_scalar_prefetch=0,
                grid=(pl.cdiv(R, tile_r),),
                in_specs=[
                    pl.BlockSpec(memory_space=pltpu.MemorySpace.SMEM),   # p
                    pl.BlockSpec((tile_r, L), lambda i: (i, 0)),         # x2d
                ],
                out_specs=pl.BlockSpec((tile_r, g), lambda i: (i, 0)),
            ),
            compiler_params=pltpu.CompilerParams(
                dimension_semantics=("parallel",),
                vmem_limit_bytes=vmem_limit,
            ),
        )(p, x2d)
    else:
        # Path B: HW is tiled (g == 1 here since packing only applies to HW<128).
        tile_hw = MAX_TILE_HW
        tile_r = _choose_rows(R, tile_hw, itemsize, target_tile_bytes)
        needs_mask = (HW % tile_hw) != 0
        kernel = _gem_reduce_kernel_factory(eps, HW, tile_hw, needs_mask)
        out2d = pl.pallas_call(
            kernel,
            out_shape=jax.ShapeDtypeStruct((R, 1), x.dtype),
            grid_spec=pltpu.PrefetchScalarGridSpec(
                num_scalar_prefetch=0,
                grid=(pl.cdiv(R, tile_r), pl.cdiv(HW, tile_hw)),
                in_specs=[
                    pl.BlockSpec(memory_space=pltpu.MemorySpace.SMEM),       # p
                    pl.BlockSpec((tile_r, tile_hw), lambda i, k: (i, k)),    # x2d
                ],
                out_specs=pl.BlockSpec((tile_r, 1), lambda i, k: (i, 0)),
                scratch_shapes=[pltpu.VMEM((tile_r, 1), jnp.float32)],
            ),
            compiler_params=pltpu.CompilerParams(
                # Row axis parallel (v7x megacore), HW reduction axis arbitrary.
                dimension_semantics=("parallel", "arbitrary"),
                vmem_limit_bytes=vmem_limit,
            ),
        )(p, x2d)

    return out2d.reshape(N, C, 1, 1)


def gem_reference(x: jax.Array, p: jax.Array, eps: float = 1e-6) -> jax.Array:
    """Pure-JAX reference mirroring torch F.avg_pool2d(x.clamp(eps)**p)**(1/p)."""
    xc = jnp.maximum(x, eps)
    xp = xc ** p[0]
    m = jnp.mean(xp, axis=(-2, -1), keepdims=True)
    return m ** (1.0 / p[0])


if __name__ == "__main__":
    # Deterministic parameter init, matching GeM.__init__(p=3): p = ones(1) * 3
    p_param = jnp.ones((1,), dtype=jnp.float32) * 3.0
    eps = 1e-6

    key = jax.random.PRNGKey(0)
    k1, k2, k3, k4 = jax.random.split(key, 4)

    # 1) Primary small shape (path A, g=1, single row block).
    x1 = jax.random.uniform(k1, (2, 4, 16, 16), dtype=jnp.float32)
    o1 = jax.block_until_ready(gem_pallas(x1, p_param, eps))
    r1 = gem_reference(x1, p_param, eps)
    assert o1.shape == (2, 4, 1, 1), o1.shape
    assert jnp.allclose(o1, r1, atol=1e-5, rtol=1e-5), (o1, r1)

    # 2) Odd, non-(8,128)-aligned shape: HW=63<128 -> lane-packed path (g=2).
    x2 = jax.random.uniform(k2, (2, 3, 7, 9), dtype=jnp.float32)
    o2 = jax.block_until_ready(gem_pallas(x2, p_param, eps))
    r2 = gem_reference(x2, p_param, eps)
    assert o2.shape == (2, 3, 1, 1), o2.shape
    assert jnp.allclose(o2, r2, atol=1e-5, rtol=1e-5), (o2, r2)

    # 3) Canonical 7x7 GeM window, multiple row blocks + partial last block.
    x3 = jax.random.uniform(k3, (4, 5, 7, 7), dtype=jnp.float32)
    o3 = jax.block_until_ready(gem_pallas(x3, p_param, eps))
    r3 = gem_reference(x3, p_param, eps)
    assert o3.shape == (4, 5, 1, 1), o3.shape
    assert jnp.allclose(o3, r3, atol=1e-5, rtol=1e-5), (o3, r3)

    # 4) HW > 8192 -> tiled-HW reduction path with masked last tile.
    x4 = jax.random.uniform(k4, (1, 2, 96, 96), dtype=jnp.float32)
    o4 = jax.block_until_ready(gem_pallas(x4, p_param, eps))
    r4 = gem_reference(x4, p_param, eps)
    assert o4.shape == (1, 2, 1, 1), o4.shape
    assert jnp.allclose(o4, r4, atol=1e-5, rtol=1e-5), (o4, r4)

    print("KERNEL_OK")
</pallas_src>

<mosaic_0001>
module attributes {stable_mosaic.version = 11 : i64} {
  func.func @kernel(%arg0: i32, %arg1: memref<1xf32, #tpu.memory_space<smem>>, %arg2: memref<8x256xf32, #tpu.memory_space<vmem>>, %arg3: memref<8x1xf32, #tpu.memory_space<vmem>>) attributes {dimension_semantics = [#tpu.dimension_semantics<parallel>], iteration_bounds = array<i64: 1>, scalar_prefetch = 0 : i64, scratch_operands = 0 : i64, tpu.core_type = #tpu.core_type<tc>, window_params = [{transform_indices = @transform_0, window_bounds = array<i64: 1>}, {transform_indices = @transform_1, window_bounds = array<i64: 8, 256>}, {transform_indices = @transform_2, window_bounds = array<i64: 8, 1>}]} {
    %c0 = arith.constant 0 : index
    %0 = memref.load %arg1[%c0] : memref<1xf32, #tpu.memory_space<smem>>
    %c0_0 = arith.constant 0 : index
    %c0_1 = arith.constant 0 : index
    %1 = vector.load %arg2[%c0_0, %c0_1] : memref<8x256xf32, #tpu.memory_space<vmem>>, vector<8x256xf32>
    %cst = arith.constant 9.99999997E-7 : f32
    %2 = vector.broadcast %cst : f32 to vector<8x256xf32>
    %3 = arith.maximumf %1, %2 : vector<8x256xf32>
    %4 = math.log %3 : vector<8x256xf32>
    %5 = vector.broadcast %0 : f32 to vector<8x256xf32>
    %6 = arith.mulf %5, %4 : vector<8x256xf32>
    %7 = math.exp %6 : vector<8x256xf32>
    %cst_2 = arith.constant dense<0.000000e+00> : vector<8xf32>
    %8 = vector.multi_reduction <add>, %7, %cst_2 [1] : vector<8x256xf32> to vector<8xf32>
    %9 = vector.shape_cast %8 : vector<8xf32> to vector<8x1xf32>
    %cst_3 = arith.constant 3.906250e-03 : f32
    %10 = vector.broadcast %cst_3 : f32 to vector<8x1xf32>
    %11 = arith.mulf %9, %10 : vector<8x1xf32>
    %cst_4 = arith.constant 1.000000e+00 : f32
    %12 = arith.divf %cst_4, %0 : f32
    %13 = math.log %11 : vector<8x1xf32>
    %14 = vector.broadcast %12 : f32 to vector<8x1xf32>
    %15 = arith.mulf %13, %14 : vector<8x1xf32>
    %16 = math.exp %15 : vector<8x1xf32>
    %c0_5 = arith.constant 0 : index
    %c0_6 = arith.constant 0 : index
    %17 = vector.load %arg3[%c0_5, %c0_6] : memref<8x1xf32, #tpu.memory_space<vmem>>, vector<8x1xf32>
    tpu.vector_store %arg3[%c0_5, %c0_6], %16 {strides = array<i32>} : memref<8x1xf32, #tpu.memory_space<vmem>>, vector<8x1xf32>,
    return
  }
  func.func @transform_0(%arg0: i32) -> i32 {
    %c0_i32 = arith.constant 0 : i32
    %c0_i32_0 = arith.constant 0 : i32
    return %c0_i32 : i32
  }
  func.func @transform_1(%arg0: i32) -> (i32, i32) {
    %c0_i32 = arith.constant 0 : i32
    %c0_i32_0 = arith.constant 0 : i32
    return %arg0, %c0_i32 : i32, i32
  }
  func.func @transform_2(%arg0: i32) -> (i32, i32) {
    %c0_i32 = arith.constant 0 : i32
    %c0_i32_0 = arith.constant 0 : i32
    return %arg0, %c0_i32 : i32, i32
  }
}

</mosaic_0001>

<bundles_post_ra>
// kernel: tpu_custom_call.1
= control target key start
LH: loop header
LB: loop body
LE: loop exit
PB: predicated region body
PF: predicated region fallthrough
CT: control target
= control target key end

     0   :  { %8 = vsyncpa [#allocation4], 0  ;;  %s101_s9 = smov [#allocation3]   ;;  %s135_s0 = inlined_call_operand.<no memory space> [shape: f32[1], index: 0, kind: input, shape index: {}]   ;;  %s136_s1 = inlined_call_operand.hbm [shape: f32[8,256], index: 1, kind: input, shape index: {}]   ;;  %s137_s2 = inlined_call_operand.vmem [shape: f32[8,1], index: 2, kind: output, shape index: {}]  }
   0x1   :  { %s17_s10 = sshll.u32 %s101_s9, 4  ;;  %s77_s13 = scalar_lea.hbm %s136_s1, 256  ;;  %s18_s10 = int_to_ptr.vmem [resolvable:$true] %s17_s10 }
   0x2   :  { %p78_p0 = scmp.ne.s32.totalorder %s136_s1, %s77_s13  ;;  %p81_p1 = scmp.lt.u32.totalorder %s77_s13, %s136_s1 }
   0x4   :  { %p83_p2 = pnand %p81_p1, %p78_p0 }
   0x6   :  { %86 = shalt.err (!%p83_p2)
}
   0x7   :  { %s87_s18 = scalar_lea.vmem %s18_s10, 256  ;;  %p92_p4 = scmp.lt.s32.totalorder %s18_s10, %s18_s10 }
   0x8   :  { %p88_p3 = scmp.ne.s32.totalorder %s18_s10, %s87_s18  ;;  %p93_p5 = scmp.lt.s32.totalorder %s87_s18, %s87_s18 }
   0xa   :  { %p94_p6 = por %p93_p5, %p92_p4 }
   0xc   :  { %p95_p7 = pnand %p94_p6, %p88_p3 }
   0xe   :  { %98 = shalt.err (!%p95_p7)
}
   0xf   :  { %20 = dma.hbm_to_vmem [thread:$0]  %s136_s1, 256, %s18_s10, [#allocation4]  }
  0x10   :  { %99 = dma.done.wait [#allocation4], 256  }
  0x11   :  { %100 = vsyncadd [#allocation4], 4294967040  ;;  %v33_v0 = vstv %s135_s0  ;;  %v25_v1 = vld [vmem:[#allocation3] sm:$0xff]  ;;  %v26_v2 = vld [vmem:[#allocation3 + $0x8] sm:$0xff]  ;;  %vm53_vm0 = vcmask 7168  }
  0x12   :  { %63 = vrcp.f32 %v33_v0  ;;  %v27_v3 = vmax.f32 %v25_v1, 1e-06  ;;  %v28_v4 = vmax.f32 %v26_v2, 1e-06 }
  0x14   :  { %65 = vlog2.f32 %v27_v3 }
  0x15   :  { %67 = vlog2.f32 %v28_v4 }
  0x1c   :  { %v64_v5 = vpop.eup %63 }
  0x1d   :  { %60 = vpush %v64_v5 }
  0x1e   :  { %v66_v6 = vpop.eup %65 }
  0x1f   :  { %v68_v7 = vpop.eup %67  ;;  %v30_v8 = vmul.f32 0.6931472, %v66_v6 }
  0x20   :  { %v32_v9 = vmul.f32 0.6931472, %v68_v7 }
  0x21   :  { %v34_v10 = vmul.f32 %v33_v0, %v30_v8 }
  0x22   :  { %v35_v11 = vmul.f32 %v33_v0, %v32_v9 }
  0x23   :  { %v36_v12 = vmul.f32 1.442695, %v34_v10 }
  0x24   :  { %v38_v13 = vmul.f32 1.442695, %v35_v11 }
  0x25   :  { %69 = vpow2.f32 %v36_v12 }
  0x26   :  { %71 = vpow2.f32 %v38_v13 }
  0x2f   :  { %v70_v14 = vpop.eup %69 }
  0x30   :  { %v72_v15 = vpop.eup %71 }
  0x31   :  { %v40_v16 = vadd.f32 %v72_v15, %v70_v14 }
  0x33   :  { %41 = vadd.xlane.f32.xlu0 %v40_v16 }
  0x4e   :  { %s61_s0 = spop %60 }
  0x4f   :  { %v49_v20 = vstv %s61_s0 }
  0xc0   :  { %v42_v17 = vpop.xlane.xlu0 %41 }
  0xc1   :  { %v43_v18 = vmul.f32 0.00390625, %v42_v17 }
  0xc3   :  { %73 = vlog2.f32 %v43_v18 }
  0xcd   :  { %v74_v19 = vpop.eup %73 }
  0xce   :  { %v48_v21 = vmul.f32 0.6931472, %v74_v19 }
  0xd0   :  { %v50_v22 = vmul.f32 %v49_v20, %v48_v21 }
  0xd2   :  { %v51_v23 = vmul.f32 1.442695, %v50_v22 }
  0xd4   :  { %75 = vpow2.f32 %v51_v23 }
  0xde   :  { %v76_v24 = vpop.eup %75 }
  0xdf   :  { %54 = vst.msk [vmem:[%s137_s2] sm:$0xff] %vm53_vm0, %v76_v24 }
  0xe0   :  { %59 = vsyncpa [#allocation4], 1 }

</bundles_post_ra>
